<compile_context>
chip_gen: v7x
topology: tpu7x:2x2x1
jax: 0.10.0
libtpu: 0.0.40
codegen_flags: <defaults>
</compile_context>

<pallas_src>
import functools

import jax
import jax.numpy as jnp
from jax.experimental import pallas as pl
from jax.experimental.pallas import tpu as pltpu


def _reprocessed_motif_kernel(
    xm_ref,      # (C, TL)       main input tile (wrapper-padded coordinates)
    xh_ref,      # (C, 128)      right-halo tile (next 128 padded columns)
    wc_ref,      # (W, M, C)     conv weight, per-tap (out x in)
    bc_ref,      # (M, 1)        conv bias
    wr_ref,      # (M, M)        reprocessor weight (out x in)
    br_ref,      # (M, 1)        reprocessor bias
    pre_ref,     # (M, TL)  out: 'pre_reprocessor' tile
    mot_ref,     # (M, TL)  out: 'motifs' tile
    *,
    W: int,
    TL: int,
):
    # Halo window for the 'same' conv: padded columns [i*TL, i*TL + TL + 128).
    window = jnp.concatenate([xm_ref[...], xh_ref[...]], axis=1)   # (C, TL+128)

    # motif_model_1: W shifted MXU matmuls (M,C) x (C,TL), + bias, ReLU.
    acc = jnp.zeros((bc_ref.shape[0], TL), jnp.float32)
    for w in range(W):                       # static unroll, W is tiny
        acc = acc + jnp.dot(
            wc_ref[w], window[:, w:w + TL], preferred_element_type=jnp.float32
        )
    pre = jnp.maximum(acc + bc_ref[...], 0.0)                      # (M, TL)
    pre_ref[...] = pre.astype(pre_ref.dtype)

    # reprocessor: pointwise linear + tanh + residual.
    rep = jnp.dot(wr_ref[...], pre, preferred_element_type=jnp.float32)
    mot_ref[...] = (jnp.tanh(rep + br_ref[...]) + pre).astype(mot_ref.dtype)


def reprocessed_motif_model(x, params, *, tile_l=None, out_dtype=jnp.float32):
    """x: (N, C_in, L) float32 one-hot sequence (PyTorch Conv1d layout).

    Returns {'pre_reprocessor': (N, M, L), 'motifs': (N, M, L)} like the
    PyTorch forward (channels-first).
    """
    wconv = params["wconv"]    # (W, C_in, M)
    bconv = params["bconv"]    # (M,)
    wrep = params["wrep"]      # (M, M)   in_motifs x out_motifs
    brep = params["brep"]      # (M,)

    N, C, L = x.shape
    W, _, M = wconv.shape
    # TODO(synk): even conv widths need PyTorch's asymmetric 'same' split.
    assert W % 2 == 1 and W <= 128, "odd conv width <= 128 expected"
    pad = W // 2

    if tile_l is None:
        tile_l = next(
            (t for t in (16384, 8192, 4096, 2048, 1024, 512, 256, 128) if L % t == 0),
            None,
        )
        if tile_l is None:
            raise ValueError("L must be a multiple of 128")
    TL = tile_l
    assert L % TL == 0 and TL % 128 == 0
    n_l = L // TL

    # Wrapper-side 'same' padding + 128 halo columns on the right so every
    # tile (including the last one) can read a full (C, TL + 128) window.
    # Shape (N, C, L + 128); zeros outside the original sequence.
    x_pad = jnp.pad(x, ((0, 0), (0, 0), (pad, 128 - pad)))

    # Tiny, VMEM-resident weights in MXU-friendly form.
    wc_t = jnp.transpose(wconv, (0, 2, 1))                         # (W, M, C)
    bc_col = bconv.reshape(M, 1)
    wr_t = wrep.T                                                  # (M_out, M_in)
    br_col = brep.reshape(M, 1)

    kernel = functools.partial(_reprocessed_motif_kernel, W=W, TL=TL)

    # O(TL) VMEM budget: double-buffered input tiles + two double-buffered
    # output tiles + compute temporaries, with headroom; capped at 48 MiB so
    # it stays well inside v7x's 64 MiB per-TC VMEM.
    est = 4 * TL * (
        2 * 8            # main input tile, double-buffered (C padded to 8 sublanes)
        + 2 * 2 * M      # two output tiles, double-buffered
        + 8              # halo window temporary
        + 6 * M          # acc / pre / rep / tanh temporaries (generous)
    ) + (4 << 20)
    vmem_limit = min(max(est, 16 << 20), 48 << 20)

    out_spec = pl.BlockSpec((None, M, TL), lambda n, i: (n, 0, i))

    pre, motifs = pl.pallas_call(
        kernel,
        out_shape=(
            jax.ShapeDtypeStruct((N, M, L), out_dtype),
            jax.ShapeDtypeStruct((N, M, L), out_dtype),
        ),
        grid=(N, n_l),
        in_specs=[
            # main input tile: padded columns [i*TL, (i+1)*TL)
            pl.BlockSpec((None, C, TL), lambda n, i: (n, 0, i)),
            # right halo: padded columns [(i+1)*TL, (i+1)*TL + 128)
            pl.BlockSpec((None, C, 128), lambda n, i: (n, 0, (i + 1) * (TL // 128))),
            # resident weights / biases
            pl.BlockSpec((W, M, C), lambda n, i: (0, 0, 0)),
            pl.BlockSpec((M, 1), lambda n, i: (0, 0)),
            pl.BlockSpec((M, M), lambda n, i: (0, 0)),
            pl.BlockSpec((M, 1), lambda n, i: (0, 0)),
        ],
        out_specs=(out_spec, out_spec),
        compiler_params=pltpu.CompilerParams(
            dimension_semantics=("parallel", "parallel"),
            vmem_limit_bytes=vmem_limit,
        ),
    )(x_pad, x_pad, wc_t, bc_col, wr_t, br_col)

    return {"pre_reprocessor": pre, "motifs": motifs}


def init_params(key, *, c_in=4, num_motifs=16, conv_width=5):
    k1, k2, k3, k4 = jax.random.split(key, 4)
    return {
        "wconv": jax.random.normal(k1, (conv_width, c_in, num_motifs), jnp.float32) * 0.1,
        "bconv": jax.random.normal(k2, (num_motifs,), jnp.float32) * 0.01,
        "wrep": jax.random.normal(k3, (num_motifs, num_motifs), jnp.float32) * 0.1,
        "brep": jax.random.normal(k4, (num_motifs,), jnp.float32) * 0.01,
    }


def _reference(x, params):
    """Pure-JAX reference (channels-first) for correctness checking."""
    wconv, bconv = params["wconv"], params["bconv"]
    wrep, brep = params["wrep"], params["brep"]
    W = wconv.shape[0]
    L = x.shape[-1]
    pad = W // 2
    xp = jnp.pad(x, ((0, 0), (0, 0), (pad, W - 1 - pad)))
    acc = sum(
        jnp.einsum("ncl,cm->nml", xp[:, :, w:w + L], wconv[w]) for w in range(W)
    )
    pre = jnp.maximum(acc + bconv[None, :, None], 0.0)
    rep = jnp.einsum("nml,mk->nkl", pre, wrep)
    motifs = jnp.tanh(rep + brep[None, :, None]) + pre
    return pre, motifs


if __name__ == "__main__":
    key = jax.random.PRNGKey(0)
    kx, kp = jax.random.split(key)

    N, C_IN, L, NUM_MOTIFS, CONV_W = 2, 4, 512, 16, 5

    # one-hot nucleotide sequence, channels-first (PyTorch nn.Conv1d layout)
    idx = jax.random.randint(kx, (N, L), 0, C_IN)
    x = jax.nn.one_hot(idx, C_IN, axis=1, dtype=jnp.float32)     # (N, 4, L)

    params = init_params(kp, c_in=C_IN, num_motifs=NUM_MOTIFS, conv_width=CONV_W)
    pre_ref, mot_ref = _reference(x, params)

    # 1) small tile -> exercises the multi-tile halo path
    out_small = reprocessed_motif_model(x, params, tile_l=128)
    jax.block_until_ready(out_small)
    # 2) default (largest-divisor) tile
    out_big = reprocessed_motif_model(x, params)
    jax.block_until_ready(out_big)

    for out in (out_small, out_big):
        assert out["pre_reprocessor"].shape == (N, NUM_MOTIFS, L)
        assert out["motifs"].shape == (N, NUM_MOTIFS, L)
        assert jnp.allclose(out["pre_reprocessor"], pre_ref, atol=1e-5)
        assert jnp.allclose(out["motifs"], mot_ref, atol=1e-5)

    print("KERNEL_OK")
</pallas_src>

<mosaic_0001>
module attributes {stable_mosaic.version = 11 : i64} {
  func.func @_reprocessed_motif_kernel(%arg0: i32, %arg1: i32, %arg2: memref<1x4x128xf32, #tpu.memory_space<vmem>>, %arg3: memref<1x4x128xf32, #tpu.memory_space<vmem>>, %arg4: memref<5x16x4xf32, #tpu.memory_space<vmem>>, %arg5: memref<16x1xf32, #tpu.memory_space<vmem>>, %arg6: memref<16x16xf32, #tpu.memory_space<vmem>>, %arg7: memref<16x1xf32, #tpu.memory_space<vmem>>, %arg8: memref<1x16x128xf32, #tpu.memory_space<vmem>>, %arg9: memref<1x16x128xf32, #tpu.memory_space<vmem>>) attributes {dimension_semantics = [#tpu.dimension_semantics<parallel>, #tpu.dimension_semantics<parallel>], iteration_bounds = array<i64: 2, 4>, scalar_prefetch = 0 : i64, scratch_operands = 0 : i64, tpu.core_type = #tpu.core_type<tc>, window_params = [{transform_indices = @transform_0, window_bounds = array<i64: 1, 4, 128>}, {transform_indices = @transform_1, window_bounds = array<i64: 1, 4, 128>}, {pipeline_mode = #tpu.pipeline_mode<synchronous>, transform_indices = @transform_2, window_bounds = array<i64: 5, 16, 4>}, {pipeline_mode = #tpu.pipeline_mode<synchronous>, transform_indices = @transform_3, window_bounds = array<i64: 16, 1>}, {pipeline_mode = #tpu.pipeline_mode<synchronous>, transform_indices = @transform_4, window_bounds = array<i64: 16, 16>}, {pipeline_mode = #tpu.pipeline_mode<synchronous>, transform_indices = @transform_5, window_bounds = array<i64: 16, 1>}, {transform_indices = @transform_6, window_bounds = array<i64: 1, 16, 128>}, {transform_indices = @transform_7, window_bounds = array<i64: 1, 16, 128>}]} {
    %c0 = arith.constant 0 : index
    %c0_0 = arith.constant 0 : index
    %c0_1 = arith.constant 0 : index
    %0 = vector.load %arg2[%c0, %c0_0, %c0_1] : memref<1x4x128xf32, #tpu.memory_space<vmem>>, vector<1x4x128xf32>
    %1 = vector.shape_cast %0 : vector<1x4x128xf32> to vector<4x128xf32>
    %c0_2 = arith.constant 0 : index
    %c0_3 = arith.constant 0 : index
    %c0_4 = arith.constant 0 : index
    %2 = vector.load %arg3[%c0_2, %c0_3, %c0_4] : memref<1x4x128xf32, #tpu.memory_space<vmem>>, vector<1x4x128xf32>
    %3 = vector.shape_cast %2 : vector<1x4x128xf32> to vector<4x128xf32>
    %4 = tpu.concatenate %1, %3 in 1 : vector<4x128xf32>, vector<4x128xf32> -> vector<4x256xf32>
    %cst = arith.constant 0.000000e+00 : f32
    %5 = vector.broadcast %cst : f32 to vector<16x128xf32>
    %c0_5 = arith.constant 0 : index
    %c0_6 = arith.constant 0 : index
    %c0_7 = arith.constant 0 : index
    %6 = vector.load %arg4[%c0_5, %c0_6, %c0_7] : memref<5x16x4xf32, #tpu.memory_space<vmem>>, vector<1x16x4xf32>
    %7 = vector.shape_cast %6 : vector<1x16x4xf32> to vector<16x4xf32>
    %8 = vector.extract_strided_slice %4 {offsets = [0, 0], sizes = [4, 128], strides = [1, 1]} : vector<4x256xf32> to vector<4x128xf32>
    %cst_8 = arith.constant dense<0.000000e+00> : vector<16x128xf32>
    %9 = tpu.matmul %7, %8, %cst_8 {dimension_numbers = #tpu.dot_dimension_numbers<[1], [0], [0], [1], [0, 0, 1, 1], [], []>} : vector<16x4xf32>, vector<4x128xf32>, vector<16x128xf32> -> vector<16x128xf32>
    %10 = arith.addf %5, %9 : vector<16x128xf32>
    %c1 = arith.constant 1 : index
    %c0_9 = arith.constant 0 : index
    %c0_10 = arith.constant 0 : index
    %11 = vector.load %arg4[%c1, %c0_9, %c0_10] : memref<5x16x4xf32, #tpu.memory_space<vmem>>, vector<1x16x4xf32>
    %12 = vector.shape_cast %11 : vector<1x16x4xf32> to vector<16x4xf32>
    %13 = vector.extract_strided_slice %4 {offsets = [0, 1], sizes = [4, 128], strides = [1, 1]} : vector<4x256xf32> to vector<4x128xf32>
    %cst_11 = arith.constant dense<0.000000e+00> : vector<16x128xf32>
    %14 = tpu.matmul %12, %13, %cst_11 {dimension_numbers = #tpu.dot_dimension_numbers<[1], [0], [0], [1], [0, 0, 1, 1], [], []>} : vector<16x4xf32>, vector<4x128xf32>, vector<16x128xf32> -> vector<16x128xf32>
    %15 = arith.addf %10, %14 : vector<16x128xf32>
    %c2 = arith.constant 2 : index
    %c0_12 = arith.constant 0 : index
    %c0_13 = arith.constant 0 : index
    %16 = vector.load %arg4[%c2, %c0_12, %c0_13] : memref<5x16x4xf32, #tpu.memory_space<vmem>>, vector<1x16x4xf32>
    %17 = vector.shape_cast %16 : vector<1x16x4xf32> to vector<16x4xf32>
    %18 = vector.extract_strided_slice %4 {offsets = [0, 2], sizes = [4, 128], strides = [1, 1]} : vector<4x256xf32> to vector<4x128xf32>
    %cst_14 = arith.constant dense<0.000000e+00> : vector<16x128xf32>
    %19 = tpu.matmul %17, %18, %cst_14 {dimension_numbers = #tpu.dot_dimension_numbers<[1], [0], [0], [1], [0, 0, 1, 1], [], []>} : vector<16x4xf32>, vector<4x128xf32>, vector<16x128xf32> -> vector<16x128xf32>
    %20 = arith.addf %15, %19 : vector<16x128xf32>
    %c3 = arith.constant 3 : index
    %c0_15 = arith.constant 0 : index
    %c0_16 = arith.constant 0 : index
    %21 = vector.load %arg4[%c3, %c0_15, %c0_16] : memref<5x16x4xf32, #tpu.memory_space<vmem>>, vector<1x16x4xf32>
    %22 = vector.shape_cast %21 : vector<1x16x4xf32> to vector<16x4xf32>
    %23 = vector.extract_strided_slice %4 {offsets = [0, 3], sizes = [4, 128], strides = [1, 1]} : vector<4x256xf32> to vector<4x128xf32>
    %cst_17 = arith.constant dense<0.000000e+00> : vector<16x128xf32>
    %24 = tpu.matmul %22, %23, %cst_17 {dimension_numbers = #tpu.dot_dimension_numbers<[1], [0], [0], [1], [0, 0, 1, 1], [], []>} : vector<16x4xf32>, vector<4x128xf32>, vector<16x128xf32> -> vector<16x128xf32>
    %25 = arith.addf %20, %24 : vector<16x128xf32>
    %c4 = arith.constant 4 : index
    %c0_18 = arith.constant 0 : index
    %c0_19 = arith.constant 0 : index
    %26 = vector.load %arg4[%c4, %c0_18, %c0_19] : memref<5x16x4xf32, #tpu.memory_space<vmem>>, vector<1x16x4xf32>
    %27 = vector.shape_cast %26 : vector<1x16x4xf32> to vector<16x4xf32>
    %28 = vector.extract_strided_slice %4 {offsets = [0, 4], sizes = [4, 128], strides = [1, 1]} : vector<4x256xf32> to vector<4x128xf32>
    %cst_20 = arith.constant dense<0.000000e+00> : vector<16x128xf32>
    %29 = tpu.matmul %27, %28, %cst_20 {dimension_numbers = #tpu.dot_dimension_numbers<[1], [0], [0], [1], [0, 0, 1, 1], [], []>} : vector<16x4xf32>, vector<4x128xf32>, vector<16x128xf32> -> vector<16x128xf32>
    %30 = arith.addf %25, %29 : vector<16x128xf32>
    %c0_21 = arith.constant 0 : index
    %c0_22 = arith.constant 0 : index
    %31 = vector.load %arg5[%c0_21, %c0_22] : memref<16x1xf32, #tpu.memory_space<vmem>>, vector<16x1xf32>
    %32 = vector.broadcast %31 : vector<16x1xf32> to vector<16x128xf32>
    %33 = arith.addf %30, %32 : vector<16x128xf32>
    %cst_23 = arith.constant 0.000000e+00 : f32
    %34 = vector.broadcast %cst_23 : f32 to vector<16x128xf32>
    %35 = arith.maximumf %33, %34 : vector<16x128xf32>
    %c0_24 = arith.constant 0 : index
    %c0_25 = arith.constant 0 : index
    %c0_26 = arith.constant 0 : index
    %36 = vector.load %arg8[%c0_24, %c0_25, %c0_26] : memref<1x16x128xf32, #tpu.memory_space<vmem>>, vector<1x16x128xf32>
    %37 = vector.shape_cast %36 : vector<1x16x128xf32> to vector<16x128xf32>
    %38 = vector.shape_cast %35 : vector<16x128xf32> to vector<1x16x128xf32>
    tpu.vector_store %arg8[%c0_24, %c0_25, %c0_26], %38 {strides = array<i32>} : memref<1x16x128xf32, #tpu.memory_space<vmem>>, vector<1x16x128xf32>,
    %c0_27 = arith.constant 0 : index
    %c0_28 = arith.constant 0 : index
    %39 = vector.load %arg6[%c0_27, %c0_28] : memref<16x16xf32, #tpu.memory_space<vmem>>, vector<16x16xf32>
    %cst_29 = arith.constant dense<0.000000e+00> : vector<16x128xf32>
    %40 = tpu.matmul %39, %35, %cst_29 {dimension_numbers = #tpu.dot_dimension_numbers<[1], [0], [0], [1], [0, 0, 1, 1], [], []>} : vector<16x16xf32>, vector<16x128xf32>, vector<16x128xf32> -> vector<16x128xf32>
    %c0_30 = arith.constant 0 : index
    %c0_31 = arith.constant 0 : index
    %41 = vector.load %arg7[%c0_30, %c0_31] : memref<16x1xf32, #tpu.memory_space<vmem>>, vector<16x1xf32>
    %42 = vector.broadcast %41 : vector<16x1xf32> to vector<16x128xf32>
    %43 = arith.addf %40, %42 : vector<16x128xf32>
    %44 = math.tanh %43 : vector<16x128xf32>
    %45 = arith.addf %44, %35 : vector<16x128xf32>
    %c0_32 = arith.constant 0 : index
    %c0_33 = arith.constant 0 : index
    %c0_34 = arith.constant 0 : index
    %46 = vector.load %arg9[%c0_32, %c0_33, %c0_34] : memref<1x16x128xf32, #tpu.memory_space<vmem>>, vector<1x16x128xf32>
    %47 = vector.shape_cast %46 : vector<1x16x128xf32> to vector<16x128xf32>
    %48 = vector.shape_cast %45 : vector<16x128xf32> to vector<1x16x128xf32>
    tpu.vector_store %arg9[%c0_32, %c0_33, %c0_34], %48 {strides = array<i32>} : memref<1x16x128xf32, #tpu.memory_space<vmem>>, vector<1x16x128xf32>,
    return
  }
  func.func @transform_0(%arg0: i32, %arg1: i32) -> (i32, i32, i32) {
    %c0_i32 = arith.constant 0 : i32
    %c0_i32_0 = arith.constant 0 : i32
    return %arg0, %c0_i32, %arg1 : i32, i32, i32
  }
  func.func @transform_1(%arg0: i32, %arg1: i32) -> (i32, i32, i32) {
    %c1_i32 = arith.constant 1 : i32
    %0 = arith.addi %arg1, %c1_i32 : i32
    %c1_i32_0 = arith.constant 1 : i32
    %1 = arith.muli %0, %c1_i32_0 : i32
    %c0_i32 = arith.constant 0 : i32
    %c0_i32_1 = arith.constant 0 : i32
    return %arg0, %c0_i32, %1 : i32, i32, i32
  }
  func.func @transform_2(%arg0: i32, %arg1: i32) -> (i32, i32, i32) {
    %c0_i32 = arith.constant 0 : i32
    %c0_i32_0 = arith.constant 0 : i32
    %c0_i32_1 = arith.constant 0 : i32
    %c0_i32_2 = arith.constant 0 : i32
    return %c0_i32, %c0_i32_0, %c0_i32_1 : i32, i32, i32
  }
  func.func @transform_3(%arg0: i32, %arg1: i32) -> (i32, i32) {
    %c0_i32 = arith.constant 0 : i32
    %c0_i32_0 = arith.constant 0 : i32
    %c0_i32_1 = arith.constant 0 : i32
    return %c0_i32, %c0_i32_0 : i32, i32
  }
  func.func @transform_4(%arg0: i32, %arg1: i32) -> (i32, i32) {
    %c0_i32 = arith.constant 0 : i32
    %c0_i32_0 = arith.constant 0 : i32
    %c0_i32_1 = arith.constant 0 : i32
    return %c0_i32, %c0_i32_0 : i32, i32
  }
  func.func @transform_5(%arg0: i32, %arg1: i32) -> (i32, i32) {
    %c0_i32 = arith.constant 0 : i32
    %c0_i32_0 = arith.constant 0 : i32
    %c0_i32_1 = arith.constant 0 : i32
    return %c0_i32, %c0_i32_0 : i32, i32
  }
  func.func @transform_6(%arg0: i32, %arg1: i32) -> (i32, i32, i32) {
    %c0_i32 = arith.constant 0 : i32
    %c0_i32_0 = arith.constant 0 : i32
    return %arg0, %c0_i32, %arg1 : i32, i32, i32
  }
  func.func @transform_7(%arg0: i32, %arg1: i32) -> (i32, i32, i32) {
    %c0_i32 = arith.constant 0 : i32
    %c0_i32_0 = arith.constant 0 : i32
    return %arg0, %c0_i32, %arg1 : i32, i32, i32
  }
}

</mosaic_0001>

<bundles_post_ra>
// kernel: tpu_custom_call.1
= control target key start
LH: loop header
LB: loop body
LE: loop exit
PB: predicated region body
PF: predicated region fallthrough
CT: control target
= control target key end

     0   :  { %13 = vsyncpa [#allocation3], 0  ;;  %s1747_s0 = inlined_call_operand.vmem [shape: f32[2,4,640], index: 0, kind: input, shape index: {}]   ;;  %s1748_s1 = inlined_call_operand.vmem [shape: f32[2,4,640], index: 1, kind: input, shape index: {}]   ;;  %s1749_s2 = inlined_call_operand.vmem [shape: f32[5,16,4], index: 2, kind: input, shape index: {}]   ;;  %s1750_s3 = inlined_call_operand.vmem [shape: f32[16,1], index: 3, kind: input, shape index: {}]   ;;  %s1751_s4 = inlined_call_operand.vmem [shape: f32[16,16], index: 4, kind: input, shape index: {}]   ;;  %s1752_s5 = inlined_call_operand.vmem [shape: f32[16,1], index: 5, kind: input, shape index: {}]   ;;  %s1753_s6 = inlined_call_operand.hbm [shape: f32[2,16,512], index: 6, kind: output, shape index: {0}]   ;;  %s1754_s7 = inlined_call_operand.hbm [shape: f32[2,16,512], index: 7, kind: output, shape index: {1}]  }
   0x1   :  { %15 = vsyncpa [#allocation3 + $0x1], 0 }
   0x2   :  { %16 = vsyncpa [#allocation5], 0 }
   0x3   :  { %18 = vsyncpa [#allocation5 + $0x1], 0  ;;  %s1482_s24 = smov 0   ;;  %s1484_s25 = smov 0  }
   0x4   :  { %s1486_s26 = smov 0   ;;  %s1488_s27 = smov 0  }
   0x5   :  { %s1490_s28 = smov 0   ;;  %s1492_s29 = smov 0  }
   0x6   :  { %s1494_s30 = smov 0   ;;  %s1496_s8 = smov 0  }
   0x7 LB: > { %1759 = sst [smem:[#allocation8_spill]] %s1422_s29  ;;  %s1108_s9 = sadd.s32 4294967295, %s1430_s8   ;;  %s1430_s8 = sphi %s1496_s8, %s24_s8   ;;  %s1426_s30 = sphi %s1494_s30, %s1770_s30   ;;  %s1422_s29 = sphi %s1492_s29, %s1769_s29   ;;  %s1418_s28 = sphi %s1490_s28, %s1768_s28   ;;  %s1414_s27 = sphi %s1488_s27, %s1767_s27   ;;  %s1410_s26 = sphi %s1486_s26, %s1773_s26   ;;  %s1406_s25 = sphi %s1484_s25, %s1772_s25   ;;  %s1402_s24 = sphi %s1482_s24, %s1771_s24  }
   0x8   : > { %1760 = sst [smem:[#allocation9_spill]] %s1426_s30  ;;  %s1109_s10 = sadd.s32 4294967294, %s1430_s8  }
   0x9   : > { %s33_s11 = sadd.s32 1, %s1422_s29  ;;  %s36_s12 = sadd.s32 1, %s1426_s30 }
   0xa   : > { %p34_p0 = scmp.ge.s32.totalorder %s33_s11, 4  ;;  %p197_p1 = scmp.ne.s32.totalorder %s1410_s26, %s1406_s25 }
   0xb   : > { %p198_p2 = scmp.eq.s32.totalorder %s1108_s9, 7  ;;  %p203_p5 = scmp.ne.s32.totalorder %s1406_s25, %s1402_s24 }
   0xc   : > { %s1775_s11 = smov (%p34_p0, %s33_s11), 0  ;;  %s1777_s12 = smov (!%p34_p0, %s36_s12), %s1426_s30 }
   0xd   : > { %1761 = sst [smem:[#allocation10_spill]] %s1775_s11  ;;  %s183_s13 = ssub.s32 %s1422_s29, %s1775_s11 }
   0xe   : > { %p1533_p3 = por %p198_p2, %p197_p1  ;;  %p38_p4 = scmp.ge.s32.totalorder %s1777_s12, 2 }
   0xf   : > { %p204_p6 = scmp.eq.s32.totalorder %s1109_s10, 7  ;;  %p1112_p7 = scmp.ge.s32.totalorder %s1430_s8, 1 }
  0x10   : > { %s1779_s12 = smov (%p38_p4, %s1777_s12), 0  ;;  %p286_p9 = scmp.lt.s32.totalorder %s1430_s8, 9 }
  0x11   : > { %1763 = sst [smem:[#allocation11_spill]] %s1779_s12  ;;  %p1542_p8 = por %p204_p6, %p203_p5 }
  0x12   : > { %s182_s16 = ssub.s32 %s1426_s30, %s1779_s12  ;;  %s187_s17 = sadd.s32 1, %s1410_s26 }
  0x13   : > { %s184_s18 = sor.u32 %s183_s13, %s182_s16  ;;  %p287_p10 = pnand %p1112_p7, %p286_p9 }
  0x14   : > { %p185_p11 = scmp.eq.s32.totalorder %s184_s18, 0  ;;  %p335_p12 = scmp.lt.s32.totalorder (!%p287_p10), %s1418_s28, 1  ;;  %vm368_vm0 = vcmask (!%p287_p10), 31744   ;;  %v1125_v0 = vld [vmem:[%s1749_s2 + $0x20] sm:$0xff] (!%p287_p10)  ;;  %v1117_v1 = vld [vmem:[%s1749_s2 + $0x10] sm:$0xff] (!%p287_p10)  ;;  %v1435_v4 = vmov (!%p287_p10), 0  }
  0x15   : > { %290 = sbr.rel (%p287_p10) target bundleno = 641 (0x281), region = 44  ;;  %p337_p13 = scmp.lt.s32.totalorder (!%p287_p10), %s1414_s27, 4  ;;  %1181 = vmatprep.mubr.msk.f32.mxu0 (!%p287_p10), %vm368_vm0, %v1125_v0  ;;  %1171 = vmatprep.mubr.msk.f32.mxu1 (!%p287_p10), %vm368_vm0, %v1117_v1  ;;  %v819_v5 = vld [vmem:[%s1750_s3 + $0x8] sm:$0xff] (!%p287_p10)  ;;  %v818_v6 = vld [vmem:[%s1750_s3] sm:$0xff] (!%p287_p10)  ;;  %vm366_vm1 = vcmask (!%p287_p10), 1039360   ;;  %vm543_vm2 = vcmask (!%p287_p10), 1031168  }
  0x16   : > { %s1551_s19 = scalar_select %p185_p11, %s1410_s26, %s187_s17  }
  0x17   : > { %s343_s16 = sadd.s32 (!%p287_p10), 1, %s1414_s27  ;;  %s1432_s22 = smov (!%p287_p10), 127   ;;  %1299 = vset.pattern.permute.xlu1 (!%p287_p10), %v1435_v4  ;;  %1298 = vset.pattern.permute.xlu0 (!%p287_p10), %v1435_v4  ;;  %v838_v7 = vld [vmem:[%s1752_s5] sm:$0xff] (!%p287_p10)  ;;  %v839_v8 = vld [vmem:[%s1752_s5 + $0x8] sm:$0xff] (!%p287_p10)  ;;  %vm375_vm3 = vcmask (!%p287_p10), 1043456   ;;  %v1118_v16 = vld [vmem:[%s1749_s2 + $0x18] sm:$0xff] (!%p287_p10) }
  0x18   : > { %1765 = sst [smem:[#allocation12_spill]] %s1551_s19  ;;  %p346_p0 = scmp.lt.s32.totalorder (!%p287_p10), %s343_s16, 4  ;;  %v1126_v15 = vld [vmem:[%s1749_s2 + $0x28] sm:$0xff] (!%p287_p10)  ;;  %vm637_vm4 = vcmask (!%p287_p10), 1022976   ;;  %v1130_v17 = vld [vmem:[%s1749_s2 + $0x30] sm:$0xff] (!%p287_p10)  ;;  %v355_v20 = vld [vmem:[%s1749_s2] sm:$0xff] (!%p287_p10) }
  0x19   : > { %s1433_s23 = smov (!%p287_p10), 126   ;;  %vm731_vm5 = vcmask (!%p287_p10), 1014784   ;;  %v1131_v25 = vld [vmem:[%s1749_s2 + $0x38] sm:$0xff] (!%p287_p10)  ;;  %v356_v26 = vld [vmem:[%s1749_s2 + $0x8] sm:$0xff] (!%p287_p10)  ;;  %v1135_v27 = vld [vmem:[%s1749_s2 + $0x40] sm:$0xff] (!%p287_p10)  ;;  %vm850_vm6 = vcmask (!%p287_p10), 130048  }
  0x1a   : > { %v1136_v28 = vld [vmem:[%s1749_s2 + $0x48] sm:$0xff] (!%p287_p10)  ;;  %v836_v29 = vld [vmem:[%s1751_s4] sm:$0xff] (!%p287_p10) }
  0x1b   : > { %v837_v43 = vld [vmem:[%s1751_s4 + $0x8] sm:$0xff] (!%p287_p10) }
  0x1c   : > { %s336_s20 = scalar_select %p335_p12, %s1418_s28, 1 }
  0x1d   : > { %s338_s21 = scalar_select %p337_p13, %s1414_s27, 4 }
  0x1e   : > { %s1213_s13 = smul.u32 5, %s336_s20  ;;  %s1781_s16 = smov (!%p346_p0, %s343_s16), 4 }
  0x20   : > { %s340_s17 = sadd.s32 %s1213_s13, %s338_s21  ;;  %s349_s9 = sadd.s32 %s1213_s13, %s1781_s16 }
  0x21   : > { %s1115_s18 = sshll.u32 %s340_s17, 2  ;;  %s1116_s20 = sshll.u32 %s349_s9, 2 }
  0x22   : > { %s342_s30 = scalar_lea.vmem %s1747_s0, %s1115_s18  ;;  %s351_s19 = scalar_lea.vmem %s1748_s1, %s1116_s20 }
  0x23   : > { %v353_v2 = vld [vmem:[%s342_s30] sm:$0xf]  ;;  %s1434_s21 = smov 125   ;;  %s1436_s30 = smov 124  }
  0x24   : > { %362 = vrot.lane.b32.xlu1 %v353_v2, %s1432_s22  ;;  %539 = vrot.lane.b32.xlu0 %v353_v2, %s1433_s23  ;;  %v354_v3 = vld [vmem:[%s351_s19] sm:$0xf]  ;;  %s1631_s20 = sand.u32 1, %s1406_s25   ;;  %s1144_s13 = sshll.u32 %s1418_s28, 3 }
  0x25   : > { %s1113_s10 = sshll.u32 %s1631_s20, 4  ;;  %s1642_s16 = sadd.s32 %s1414_s27, %s1144_s13 }
  0x26   : > { %s1145_s29 = sshll.u32 %s1642_s16, 7  ;;  %s1437_s27 = smov [#allocation2]  }
  0x27   : > { %s1652_s18 = scalar_lea.hbm %s1753_s6, %s1145_s29  ;;  %s1308_s28 = sshll.u32 %s1437_s27, 4  ;;  %s1309_s28 = int_to_ptr.vmem [resolvable:$false] %s1308_s28 }
  0x28   : > { %364 = vrot.lane.b32.xlu1 %v354_v3, %s1432_s22  ;;  %541 = vrot.lane.b32.xlu0 %v354_v3, %s1433_s23  ;;  %s939_s22 = scalar_lea.sflag [#allocation3], %s1631_s20  ;;  %s1310_s9 = scalar_lea.vmem %s1309_s28, 512 }
  0x2c   : > { %635 = vrot.lane.b32.xlu1 %v354_v3, %s1434_s21  ;;  %633 = vrot.lane.b32.xlu0 %v353_v2, %s1434_s21  ;;  %s327_s21 = scalar_lea.vmem [#allocation2], %s1113_s10 }
  0x2d   : > { %s958_s12 = sshll.u32 %s327_s21, 4  ;;  %s1644_s12 = int_to_ptr.vmem [resolvable:$true] %s958_s12 }
  0x2e   : > { %s1304_s23 = scalar_lea.vmem %s1644_s12, 256  ;;  %p1311_p5 = scmp.lt.s32.totalorder %s1644_s12, %s1309_s28 }
  0x2f   : > { %p1305_p1 = scmp.ne.s32.totalorder %s1644_s12, %s1304_s23  ;;  %p1312_p6 = scmp.lt.s32.totalorder %s1310_s9, %s1304_s23 }
  0x30   : > { %729 = vrot.lane.b32.xlu1 %v354_v3, %s1436_s30  ;;  %727 = vrot.lane.b32.xlu0 %v353_v2, %s1436_s30 }
  0x31   : > { %p1306_p2 = pnand %p1305_p1, %p1533_p3  ;;  %p1313_p7 = por %p1312_p6, %p1311_p5 }
  0x33   : > { %p1307_p4 = pneg %p1306_p2 }
  0x34   : > { %827 = vperm.xlu1 %1299, %v819_v5   ;;  %822 = vperm.xlu0 %1298, %v818_v6  }
  0x35   : > { %p1314_p9 = pnand %p1313_p7, %p1307_p4 }
  0x38   : > { %842 = vperm.xlu1 %1299, %v838_v7   ;;  %847 = vperm.xlu0 %1298, %v839_v8  }
  0x96   : > { %v363_v9 = vpop.permute.xlu1 %362  ;;  %v540_v10 = vpop.permute.xlu0 %539 }
  0x9a   : > { %v365_v11 = vpop.permute.xlu1 %364  ;;  %v542_v12 = vpop.permute.xlu0 %541 }
  0x9b   : > { %v367_v13 = vsel %vm366_vm1, %v363_v9, %v365_v11  ;;  %v544_v14 = vsel %vm543_vm2, %v540_v10, %v542_v12 }
  0x9c   : > { %1169 = vmatprep.subr.msk.mxu1 %vm375_vm3, %v367_v13  ;;  %1179 = vmatprep.subr.msk.mxu0 %vm375_vm3, %v544_v14 }
  0x9d   : > { %1170 = vmatpush3.msk.msra.mxu1 %vm375_vm3, %v367_v13  ;;  %1180 = vmatpush3.msk.msra.mxu0 %vm375_vm3, %v544_v14 }
  0x9e   : > { %v636_v18 = vpop.permute.xlu1 %635  ;;  %1182 = vmatmul.mubr.msk.f32.vlgmr.msra.gmra.mrb[0].mxu0 %vm368_vm0, %v1126_v15  ;;  %v634_v19 = vpop.permute.xlu0 %633  ;;  %1172 = vmatmul.mubr.msk.f32.vlgmr.msra.gmra.mrb[0].mxu1 %vm368_vm0, %v1118_v16 }
  0x9f   : > { %v638_v21 = vsel %vm637_vm4, %v634_v19, %v636_v18  ;;  %1174 = vmatprep.subr.msk.mxu1 %vm375_vm3, %v353_v2  ;;  %1186 = vmatprep.mubr.msk.f32.mxu0 %vm368_vm0, %v1130_v17 }
  0xa0   : > { %1184 = vmatprep.subr.msk.mxu0 %vm375_vm3, %v638_v21  ;;  %1175 = vmatpush3.msk.msra.mxu1 %vm375_vm3, %v353_v2 }
  0xa1   : > { %1185 = vmatpush3.msk.msra.mxu0 %vm375_vm3, %v638_v21  ;;  %1176 = vmatprep.mubr.msk.f32.mxu1 %vm368_vm0, %v355_v20 }
  0xa2   : > { %v730_v22 = vpop.permute.xlu1 %729  ;;  %v728_v23 = vpop.permute.xlu0 %727 }
  0xa3   : > { %v732_v24 = vsel %vm731_vm5, %v728_v23, %v730_v22 }
  0xa4   : > { %1189 = vmatprep.subr.msk.mxu0 %vm375_vm3, %v732_v24 }
  0xa6   : > { %1187 = vmatmul.mubr.msk.f32.vlgmr.msra.gmra.mrb[0].mxu0 %vm368_vm0, %v1131_v25  ;;  %1177 = vmatmul.mubr.msk.f32.vlgmr.msra.gmra.mrb[0].mxu1 %vm368_vm0, %v356_v26 }
  0xa7   : > { %1190 = vmatpush3.msk.msra.mxu0 %vm375_vm3, %v732_v24  ;;  %1191 = vmatprep.mubr.msk.f32.mxu0 %vm368_vm0, %v1135_v27 }
  0xa8   : > { %1198 = vmatprep.mubr.msk.f32.mxu1 %vm850_vm6, %v836_v29 }
  0xae   : > { %1192 = vmatmul.mubr.msk.f32.vlgmr.msra.gmra.mrb[0].mxu0 %vm368_vm0, %v1136_v28 }
  0xb3   : > { %v828_v35 = vpop.permute.xlu1 %827  ;;  %v823_v38 = vpop.permute.xlu0 %822 }
 0x179   : > { %v1178_v30 = vpop.f32.mrb[0].mxu1 }
 0x17a   : > { %v527_v31 = vpop.f32.mrb[1].mxu1 }
 0x181   : > { %v1193_v32 = vpop.f32.mrb[0].mxu0 }
 0x182   : > { %v1205_v33 = vadd.f32 %v1193_v32, %v1178_v30  ;;  %v807_v34 = vpop.f32.mrb[1].mxu0 }
 0x183   : > { %v1206_v36 = vadd.f32 %v807_v34, %v527_v31 }
 0x184   : > { %v831_v37 = vadd.f32 %v1205_v33, %v828_v35 }
 0x185   : > { %v830_v39 = vadd.f32 %v1206_v36, %v823_v38 }
 0x186   : > { %v833_v40 = vmax.f32 %v831_v37, 0.0 }
 0x187   : > { %v832_v41 = vmax.f32 %v830_v39, 0.0 }
 0x188   : > { %835 = vst [vmem:[%s327_s21 + $0x8] sm:$0xff] %v833_v40 }
 0x189   : > { %834 = vst [vmem:[%s327_s21] sm:$0xff] %v832_v41  ;;  %v1201_v42 = vpack.c.bf16 %v833_v40, %v832_v41 }
 0x18b   : > { %1202 = vmatprep.subr.bf16.mxu1 %v1201_v42 }
 0x18c   : > { %1204 = vmatpush3.bf16.msra.mxu1 %v1201_v42 }
 0x18f   : > { %1199 = vmatmul.mubr.msk.f32.vlgmr.msra.gmra.mrb[2].mxu1 %vm850_vm6, %v837_v43 }
 0x190   : > { %1317 = shalt.err (!%p1314_p9)
}
 0x191   : > { %s1318_s21 = scalar_lea.hbm %s1652_s18, 256  ;;  %s1322_s13 = scalar_lea.hbm %s1753_s6, 2048 }
 0x192   : > { %p1319_p10 = scmp.ne.s32.totalorder %s1652_s18, %s1318_s21  ;;  %p1323_p13 = scmp.lt.u32.totalorder %s1652_s18, %s1753_s6 }
 0x193   : > { %p1324_p0 = scmp.lt.u32.totalorder %s1322_s13, %s1318_s21  ;;  %p1326_p2 = scmp.lt.u32.totalorder %s1318_s21, %s1652_s18 }
 0x194   : > { %p1320_p11 = pnand %p1319_p10, %p1533_p3 }
 0x195   : > { %p1325_p1 = por %p1324_p0, %p1323_p13 }
 0x196   : > { %p1321_p12 = pneg %p1320_p11 }
 0x197   : > { %p1327_p4 = por %p1326_p2, %p1325_p1 }
 0x199   : > { %p1328_p5 = pnand %p1327_p4, %p1321_p12 }
 0x19b   : > { %1331 = shalt.err (!%p1328_p5)
}
 0x19c   : > { %s1438_s23 = smov 128   ;;  %s1439_s27 = smov 512   ;;  %v848_v44 = vpop.permute.xlu0 %847  ;;  %v843_v46 = vpop.permute.xlu1 %842 }
 0x19d   : > { %s1440_s28 = smov 8   ;;  %s334_s9 = scalar_lea.vmem [#allocation4], %s1113_s10 }
 0x19e   : > { %1214 = dma.vmem_to_hbm [thread:$0]  (%p1533_p3), %s1644_s12, 256, %s1652_s18, %s939_s22, %s1438_s23, %s1439_s27, %s1440_s28  }
 0x19f   : > { %s975_s21 = sshll.u32 %s334_s9, 4  ;;  %s1690_s22 = scalar_lea.hbm %s1754_s7, %s1145_s29  ;;  %s1683_s21 = int_to_ptr.vmem [resolvable:$true] %s975_s21 }
 0x1a0   : > { %s944_s30 = scalar_lea.sflag [#allocation5], %s1631_s20  ;;  %s1332_s10 = scalar_lea.vmem %s1683_s21, 256 }
 0x1a1   : > { %p1333_p6 = scmp.ne.s32.totalorder %s1683_s21, %s1332_s10  ;;  %s1441_s11 = smov [#allocation4]  }
 0x1a2   : > { %s1336_s13 = sshll.u32 %s1441_s11, 4  ;;  %s1337_s13 = int_to_ptr.vmem [resolvable:$false] %s1336_s13 }
 0x1a3   : > { %p1334_p7 = pnand %p1333_p6, %p1533_p3  ;;  %s1338_s19 = scalar_lea.vmem %s1337_s13, 512 }
 0x1a4   : > { %p1339_p10 = scmp.lt.s32.totalorder %s1683_s21, %s1337_s13  ;;  %p1340_p11 = scmp.lt.s32.totalorder %s1338_s19, %s1332_s10 }
 0x1a5   : > { %p1335_p9 = pneg %p1334_p7 }
 0x1a6   : > { %p1341_p12 = por %p1340_p11, %p1339_p10 }
 0x1a8   : > { %p1342_p13 = pnand %p1341_p12, %p1335_p9 }
 0x262   : > { %v1200_v45 = vpop.f32.mrb[2].mxu1 }
 0x263   : > { %v929_v47 = vadd.f32 %v1200_v45, %v848_v44  ;;  %v923_v48 = vpop.f32.mrb[3].mxu1 }
 0x264   : > { %v924_v49 = vadd.f32 %v923_v48, %v843_v46 }
 0x265   : > { %1300 = vtanh.f32 %v929_v47 }
 0x266   : > { %1302 = vtanh.f32 %v924_v49 }
 0x26f   : > { %v1301_v50 = vpop.eup %1300 }
 0x270   : > { %v1303_v51 = vpop.eup %1302  ;;  %v935_v52 = vadd.f32 %v1301_v50, %v833_v40 }
 0x271   : > { %v934_v53 = vadd.f32 %v1303_v51, %v832_v41 }
 0x272   : > { %937 = vst [vmem:[%s334_s9 + $0x8] sm:$0xff] %v935_v52 }
 0x273   : > { %936 = vst [vmem:[%s334_s9] sm:$0xff] %v934_v53 }
 0x274   : > { %1345 = shalt.err (!%p1342_p13)
}
 0x275   : > { %s1346_s16 = scalar_lea.hbm %s1690_s22, 256  ;;  %s1350_s9 = scalar_lea.hbm %s1754_s7, 2048 }
 0x276   : > { %p1347_p0 = scmp.ne.s32.totalorder %s1690_s22, %s1346_s16  ;;  %p1351_p4 = scmp.lt.u32.totalorder %s1690_s22, %s1754_s7 }
 0x277   : > { %p1352_p5 = scmp.lt.u32.totalorder %s1350_s9, %s1346_s16  ;;  %p1354_p7 = scmp.lt.u32.totalorder %s1346_s16, %s1690_s22 }
 0x278   : > { %p1348_p1 = pnand %p1347_p0, %p1533_p3 }
 0x279   : > { %p1353_p6 = por %p1352_p5, %p1351_p4 }
 0x27a   : > { %p1349_p2 = pneg %p1348_p1 }
 0x27b   : > { %p1355_p9 = por %p1354_p7, %p1353_p6 }
 0x27d   : > { %p1356_p10 = pnand %p1355_p9, %p1349_p2 }
 0x27f   : > { %1359 = shalt.err (!%p1356_p10)
}
 0x280   : > { %1215 = dma.vmem_to_hbm [thread:$0]  (%p1533_p3), %s1683_s21, 256, %s1690_s22, %s944_s30, %s1438_s23, %s1439_s27, %s1440_s28  }
 0x281 PF: > { %p1225_p11 = scmp.ge.s32.totalorder %s1430_s8, 2  ;;  %s990_s10 = sand.u32 1, %s1402_s24  }
 0x282   : > { %s991_s11 = scalar_lea.sflag [#allocation3], %s990_s10 }
 0x283   : > { %p1219_p12 = pnand %p1225_p11, %p1542_p8 }
 0x285   : > { %1393 = dma.done.wait (!%p1219_p12), %s991_s11, 256  }
 0x286   : > { %1395 = vsyncadd (!%p1219_p12), %s991_s11, 4294967040  ;;  %s1000_s14 = scalar_lea.sflag [#allocation5], %s990_s10 }
 0x287   : > { %1397 = dma.done.wait (!%p1219_p12), %s1000_s14, 256  }
 0x288   : > { %1399 = vsyncadd (!%p1219_p12), %s1000_s14, 4294967040  ;;  %s24_s8 = sadd.s32 1, %s1430_s8   ;;  %s1766_s20 = sld [smem:[#allocation12_spill]] }
 0x289   : > { %p21_p13 = scmp.ge.s32.totalorder %s24_s8, 10   ;;  %s1767_s27 = sld [smem:[#allocation8_spill]] }
 0x28a   : > { %s1768_s28 = sld [smem:[#allocation9_spill]]  ;;  %s1769_s29 = sld [smem:[#allocation10_spill]] }
 0x28b   : > { %s1770_s30 = sld [smem:[#allocation11_spill]]  ;;  %s1771_s24 = smov %s1406_s25 }
 0x28c   : > { %s1772_s25 = smov %s1410_s26  ;;  %23 = sbr.rel (!%p21_p13) target bundleno = 7 (0x7), region = 103 }
 0x28e   : > { %s1773_s26 = smov %s1766_s20 }
 0x293   :  { %1005 = vsyncpa [#allocation3], 1 }
 0x294   :  { %1007 = vsyncpa [#allocation3 + $0x1], 1 }
 0x295   :  { %1008 = vsyncpa [#allocation5], 1 }
 0x296   :  { %1010 = vsyncpa [#allocation5 + $0x1], 1 }

</bundles_post_ra>
